<compile_context>
chip_gen: v7x
topology: tpu7x:2x2x1
jax: 0.10.0
libtpu: 0.0.40
codegen_flags: <defaults>
</compile_context>

<pallas_src>
import functools

import jax
import jax.numpy as jnp
from jax.experimental import pallas as pl
from jax.experimental.pallas import tpu as pltpu

ALPHA = 0.25
GAMMA = 2.0

_LANES = 128
# 8192 rows * 128 lanes * 4 B = 4 MiB per f32 block.
# 3 arrays (x, t, out) * 2 pipeline buffers * 4 MiB = 24 MiB of VMEM.
_MAX_TILE_ROWS = 8192
# Explicit scoped-VMEM budget: 24 MiB footprint + headroom for compiler
# scratch/spills.  Safe on v5e/v6e (128 MiB physical) and v7x (64 MiB physical,
# keep overrides <= ~48 MiB).
_VMEM_LIMIT_BYTES = 40 * 1024 * 1024


def _focal_loss_kernel(logits_ref, target_ref, out_ref, *, alpha, gamma):
    x = logits_ref[...].astype(jnp.float32)
    t = target_ref[...].astype(jnp.float32)

    # One exp per element, reused for both the BCE log-term and the sigmoid.
    e = jnp.exp(-jnp.abs(x))                              # EUP: exp

    # F.binary_cross_entropy_with_logits(x, t, reduction='none'), stable form:
    #   max(x, 0) - x*t + log1p(exp(-|x|))
    ce = jnp.maximum(x, 0.0) - x * t + jnp.log1p(e)       # EUP: log

    # sigmoid(x) from the same exp:  r = 1 / (1 + e)
    #   x >= 0: sigmoid = r,    1 - sigmoid = e*r
    #   x <  0: sigmoid = e*r,  1 - sigmoid = r
    # pt = where(t == 1, sigmoid, 1 - sigmoid)
    #   => 1 - pt = r  when (t == 1) XOR (x >= 0), else e*r.
    # Full-precision reciprocal: the Newton refinement rides in free VPU slots
    # of a memory-bound kernel and keeps parity with jax.nn.sigmoid.
    r = pl.reciprocal(1.0 + e, approx=False)              # EUP: rcp
    one_minus_pt = jnp.where(jnp.logical_xor(t == 1.0, x >= 0.0), r, e * r)

    # alpha_factor = t*alpha + (1-t)*(1-alpha) = (1-alpha) + t*(2*alpha - 1)
    alpha_factor = (1.0 - alpha) + t * (2.0 * alpha - 1.0)

    # loss = alpha_factor * (1 - pt)**gamma * ce   (elementwise, no reduction)
    if gamma == 2.0:
        modulator = one_minus_pt * one_minus_pt
    else:
        modulator = jnp.power(one_minus_pt, gamma)

    out_ref[...] = (alpha_factor * modulator * ce).astype(out_ref.dtype)


def focal_loss(pred_logits, target, alpha=ALPHA, gamma=GAMMA):
    assert pred_logits.shape == target.shape
    orig_shape = pred_logits.shape
    out_dtype = pred_logits.dtype

    n = pred_logits.size
    # Flatten to a lane-dense [rows, 128] slab.  Reshape of a contiguous array
    # is free; pad only when n is not a multiple of 128 (lane requirement).
    pad = (-n) % _LANES
    x_flat = pred_logits.reshape(-1)
    t_flat = target.reshape(-1)
    if pad:
        x_flat = jnp.pad(x_flat, (0, pad))
        t_flat = jnp.pad(t_flat, (0, pad))
    rows = (n + pad) // _LANES
    x2d = x_flat.reshape(rows, _LANES)
    t2d = t_flat.reshape(rows, _LANES)

    # tile_rows is either _MAX_TILE_ROWS (a multiple of 8/16/32, so fine for
    # f32/bf16/int8 sublane tiling) or equals the full row extent, which
    # satisfies the (sublane, 128) tiling rule in all cases.
    tile_rows = min(_MAX_TILE_ROWS, rows)
    # pl.cdiv + Pallas boundary masking: a ragged final block is handled
    # correctly (OOB rows are read-clamped, never stored).
    grid = (pl.cdiv(rows, tile_rows),)

    kernel = functools.partial(
        _focal_loss_kernel, alpha=float(alpha), gamma=float(gamma))

    # Advisory cost estimate: ~12 VPU flops + 3 transcendentals (exp, log, rcp)
    # per element; HBM traffic = x read + t read + out write.
    n_pad = rows * _LANES
    cost = pl.CostEstimate(
        flops=12 * n_pad,
        transcendentals=3 * n_pad,
        bytes_accessed=2 * x2d.size * x2d.dtype.itemsize
        + t2d.size * t2d.dtype.itemsize,
    )

    out2d = pl.pallas_call(
        kernel,
        out_shape=jax.ShapeDtypeStruct((rows, _LANES), out_dtype),
        grid_spec=pltpu.PrefetchScalarGridSpec(
            num_scalar_prefetch=0,
            grid=grid,
            in_specs=[
                pl.BlockSpec((tile_rows, _LANES), lambda i: (i, 0)),
                pl.BlockSpec((tile_rows, _LANES), lambda i: (i, 0)),
            ],
            out_specs=pl.BlockSpec((tile_rows, _LANES), lambda i: (i, 0)),
        ),
        compiler_params=pltpu.CompilerParams(
            # Lets Mosaic shard grid steps across v7x's two TensorCores;
            # measured-neutral on single-TC v5e/v6e.
            dimension_semantics=("parallel",),
            vmem_limit_bytes=_VMEM_LIMIT_BYTES,
        ),
        cost_estimate=cost,
    )(x2d, t2d)

    out_flat = out2d.reshape(-1)
    if pad:
        out_flat = out_flat[:n]
    return out_flat.reshape(orig_shape)


def _focal_loss_ref(pred_logits, target, alpha=ALPHA, gamma=GAMMA):
    """Pure-JAX reference mirroring the PyTorch module exactly."""
    x = pred_logits.astype(jnp.float32)
    t = target.astype(jnp.float32)
    pred = jax.nn.sigmoid(x)
    ce = jnp.maximum(x, 0.0) - x * t + jnp.log1p(jnp.exp(-jnp.abs(x)))
    alpha_f = t * alpha + (1.0 - t) * (1.0 - alpha)
    pt = jnp.where(t == 1.0, pred, 1.0 - pred)
    return (alpha_f * (1.0 - pt) ** gamma * ce).astype(pred_logits.dtype)


if __name__ == "__main__":
    key = jax.random.PRNGKey(0)
    k1, k2, k3, k4, k5, k6 = jax.random.split(key, 6)

    # Primary example: detection-head-style logits [N, C, H, W] = [2, 4, 16, 16].
    shape = (2, 4, 16, 16)
    pred_logits = jax.random.normal(k1, shape, dtype=jnp.float32) * 3.0
    target = jax.random.bernoulli(k2, p=0.3, shape=shape).astype(jnp.float32)

    out = jax.block_until_ready(focal_loss(pred_logits, target))
    ref = _focal_loss_ref(pred_logits, target)
    assert out.shape == shape and out.dtype == pred_logits.dtype
    assert jnp.allclose(out, ref, atol=1e-5, rtol=1e-5), "mismatch (main shape)"

    # Narrow-dtype target (binary labels in bf16): stays narrow on the HBM
    # read; cast to f32 happens in-register inside the kernel.
    target_bf16 = target.astype(jnp.bfloat16)
    out_nt = jax.block_until_ready(focal_loss(pred_logits, target_bf16))
    assert jnp.allclose(out_nt, ref, atol=1e-5, rtol=1e-5), "mismatch (bf16 target)"

    # Ragged element count (945, not a multiple of 128): pads the flat array
    # once to the next multiple of 128 lanes only.
    shape_ragged = (3, 9, 7, 5)
    xr = jax.random.normal(k3, shape_ragged, dtype=jnp.float32) * 3.0
    tr = jax.random.bernoulli(k4, p=0.3, shape=shape_ragged).astype(jnp.float32)
    out_r = jax.block_until_ready(focal_loss(xr, tr))
    assert jnp.allclose(out_r, _focal_loss_ref(xr, tr), atol=1e-5, rtol=1e-5), \
        "mismatch (ragged)"

    # Multi-block path with a partial tail block
    # (rows = 9216 > tile_rows = 8192, grid = (2,)).
    shape_big = (2, 4, 384, 384)
    xb = jax.random.normal(k5, shape_big, dtype=jnp.float32) * 3.0
    tb = jax.random.bernoulli(k6, p=0.3, shape=shape_big).astype(jnp.float32)
    out_b = jax.block_until_ready(focal_loss(xb, tb))
    assert jnp.allclose(out_b, _focal_loss_ref(xb, tb), atol=1e-5, rtol=1e-5), \
        "mismatch (tail block)"

    print("KERNEL_OK")
</pallas_src>

<mosaic_0001>
module attributes {stable_mosaic.version = 11 : i64} {
  func.func @_focal_loss_kernel(%arg0: i32, %arg1: memref<16x128xf32, #tpu.memory_space<vmem>>, %arg2: memref<16x128xf32, #tpu.memory_space<vmem>>, %arg3: memref<16x128xf32, #tpu.memory_space<vmem>>) attributes {dimension_semantics = [#tpu.dimension_semantics<parallel>], iteration_bounds = array<i64: 1>, scalar_prefetch = 0 : i64, scratch_operands = 0 : i64, tpu.core_type = #tpu.core_type<tc>, window_params = [{transform_indices = @transform_0, window_bounds = array<i64: 16, 128>}, {transform_indices = @transform_1, window_bounds = array<i64: 16, 128>}, {transform_indices = @transform_2, window_bounds = array<i64: 16, 128>}]} {
    %c0 = arith.constant 0 : index
    %c0_0 = arith.constant 0 : index
    %0 = vector.load %arg1[%c0, %c0_0] : memref<16x128xf32, #tpu.memory_space<vmem>>, vector<16x128xf32>
    %c0_1 = arith.constant 0 : index
    %c0_2 = arith.constant 0 : index
    %1 = vector.load %arg2[%c0_1, %c0_2] : memref<16x128xf32, #tpu.memory_space<vmem>>, vector<16x128xf32>
    %2 = math.absf %0 : vector<16x128xf32>
    %cst = arith.constant 0.000000e+00 : f32
    %3 = vector.broadcast %cst : f32 to vector<16x128xf32>
    %4 = arith.subf %3, %2 : vector<16x128xf32>
    %5 = math.exp %4 : vector<16x128xf32>
    %cst_3 = arith.constant 0.000000e+00 : f32
    %6 = vector.broadcast %cst_3 : f32 to vector<16x128xf32>
    %7 = arith.maximumf %0, %6 : vector<16x128xf32>
    %8 = arith.mulf %0, %1 : vector<16x128xf32>
    %9 = arith.subf %7, %8 : vector<16x128xf32>
    %10 = math.log1p %5 : vector<16x128xf32>
    %11 = arith.addf %9, %10 : vector<16x128xf32>
    %cst_4 = arith.constant 1.000000e+00 : f32
    %12 = vector.broadcast %cst_4 : f32 to vector<16x128xf32>
    %13 = arith.addf %12, %5 : vector<16x128xf32>
    %14 = tpu.reciprocal %13 : vector<16x128xf32> -> vector<16x128xf32>
    %cst_5 = arith.constant 1.000000e+00 : f32
    %15 = vector.broadcast %cst_5 : f32 to vector<16x128xf32>
    %16 = arith.cmpf oeq, %1, %15 : vector<16x128xf32>
    %cst_6 = arith.constant 0.000000e+00 : f32
    %17 = vector.broadcast %cst_6 : f32 to vector<16x128xf32>
    %18 = arith.cmpf oge, %0, %17 : vector<16x128xf32>
    %19 = arith.xori %16, %18 : vector<16x128xi1>
    %20 = arith.mulf %5, %14 : vector<16x128xf32>
    %21 = arith.select %19, %14, %20 : vector<16x128xi1>, vector<16x128xf32>
    %cst_7 = arith.constant -5.000000e-01 : f32
    %22 = vector.broadcast %cst_7 : f32 to vector<16x128xf32>
    %23 = arith.mulf %1, %22 : vector<16x128xf32>
    %cst_8 = arith.constant 7.500000e-01 : f32
    %24 = vector.broadcast %cst_8 : f32 to vector<16x128xf32>
    %25 = arith.addf %24, %23 : vector<16x128xf32>
    %26 = arith.mulf %21, %21 : vector<16x128xf32>
    %27 = arith.mulf %25, %26 : vector<16x128xf32>
    %28 = arith.mulf %27, %11 : vector<16x128xf32>
    %c0_9 = arith.constant 0 : index
    %c0_10 = arith.constant 0 : index
    %29 = vector.load %arg3[%c0_9, %c0_10] : memref<16x128xf32, #tpu.memory_space<vmem>>, vector<16x128xf32>
    tpu.vector_store %arg3[%c0_9, %c0_10], %28 {strides = array<i32>} : memref<16x128xf32, #tpu.memory_space<vmem>>, vector<16x128xf32>,
    return
  }
  func.func @transform_0(%arg0: i32) -> (i32, i32) {
    %c0_i32 = arith.constant 0 : i32
    %c0_i32_0 = arith.constant 0 : i32
    return %arg0, %c0_i32 : i32, i32
  }
  func.func @transform_1(%arg0: i32) -> (i32, i32) {
    %c0_i32 = arith.constant 0 : i32
    %c0_i32_0 = arith.constant 0 : i32
    return %arg0, %c0_i32 : i32, i32
  }
  func.func @transform_2(%arg0: i32) -> (i32, i32) {
    %c0_i32 = arith.constant 0 : i32
    %c0_i32_0 = arith.constant 0 : i32
    return %arg0, %c0_i32 : i32, i32
  }
}

</mosaic_0001>

<bundles_post_ra>
// kernel: tpu_custom_call.1
= control target key start
LH: loop header
LB: loop body
LE: loop exit
PB: predicated region body
PF: predicated region fallthrough
CT: control target
= control target key end

     0   :  { %7 = vsyncpa [#allocation3], 0  ;;  %s284_s0 = inlined_call_operand.hbm [shape: f32[16,128], index: 0, kind: input, shape index: {}]   ;;  %s285_s1 = inlined_call_operand.hbm [shape: f32[16,128], index: 1, kind: input, shape index: {}]   ;;  %s286_s2 = inlined_call_operand.hbm [shape: f32[16,128], index: 2, kind: output, shape index: {}]  }
   0x1   :  { %8 = vsyncpa [#allocation6], 0 }
   0x2   :  { %9 = vsyncpa [#allocation4], 0  ;;  %s211_s9 = smov [#allocation2]   ;;  %s139_s13 = scalar_lea.hbm %s284_s0, 256 }
   0x3   :  { %s15_s10 = sshll.u32 %s211_s9, 4  ;;  %p140_p0 = scmp.ne.s32.totalorder %s284_s0, %s139_s13  ;;  %s16_s10 = int_to_ptr.vmem [resolvable:$true] %s15_s10 }
   0x4   :  { %p143_p1 = scmp.lt.u32.totalorder %s139_s13, %s284_s0 }
   0x6   :  { %p145_p2 = pnand %p143_p1, %p140_p0 }
   0x8   :  { %148 = shalt.err (!%p145_p2)
}
   0x9   :  { %s149_s18 = scalar_lea.vmem %s16_s10, 256  ;;  %p154_p4 = scmp.lt.s32.totalorder %s16_s10, %s16_s10 }
   0xa   :  { %p150_p3 = scmp.ne.s32.totalorder %s16_s10, %s149_s18  ;;  %p155_p5 = scmp.lt.s32.totalorder %s149_s18, %s149_s18 }
   0xc   :  { %p156_p6 = por %p155_p5, %p154_p4 }
   0xe   :  { %p157_p7 = pnand %p156_p6, %p150_p3 }
  0x10   :  { %160 = shalt.err (!%p157_p7)
}
  0x11   :  { %s212_s19 = smov 128   ;;  %s213_s20 = smov 8  }
  0x12   :  { %21 = dma.hbm_to_vmem [thread:$0]  %s284_s0, 256, %s16_s10, [#allocation3], %s212_s19, %s212_s19, %s213_s20  }
  0x13   :  { %s214_s23 = smov [#allocation5]   ;;  %s161_s27 = scalar_lea.hbm %s285_s1, 256 }
  0x14   :  { %s27_s24 = sshll.u32 %s214_s23, 4  ;;  %p162_p8 = scmp.ne.s32.totalorder %s285_s1, %s161_s27  ;;  %s28_s24 = int_to_ptr.vmem [resolvable:$true] %s27_s24 }
  0x15   :  { %p165_p9 = scmp.lt.u32.totalorder %s161_s27, %s285_s1 }
  0x17   :  { %p167_p10 = pnand %p165_p9, %p162_p8 }
  0x19   :  { %170 = shalt.err (!%p167_p10)
}
  0x1a   :  { %s171_s4 = scalar_lea.vmem %s28_s24, 256  ;;  %p176_p12 = scmp.lt.s32.totalorder %s28_s24, %s28_s24 }
  0x1b   :  { %p172_p11 = scmp.ne.s32.totalorder %s28_s24, %s171_s4  ;;  %p177_p13 = scmp.lt.s32.totalorder %s171_s4, %s171_s4 }
  0x1d   :  { %p178_p0 = por %p177_p13, %p176_p12 }
  0x1f   :  { %p179_p1 = pnand %p178_p0, %p172_p11 }
  0x21   :  { %182 = shalt.err (!%p179_p1)
}
  0x22   :  { %33 = dma.hbm_to_vmem [thread:$0]  %s285_s1, 256, %s28_s24, [#allocation6], %s212_s19, %s212_s19, %s213_s20  }
  0x23   :  { %205 = dma.done.wait [#allocation3], 256  }
  0x24   :  { %206 = vsyncadd [#allocation3], 4294967040 }
  0x25   :  { %207 = dma.done.wait [#allocation6], 256  }
  0x26   :  { %208 = vsyncadd [#allocation6], 4294967040  ;;  %v40_v0 = vld [vmem:[#allocation2] sm:$0xff]  ;;  %v41_v1 = vld [vmem:[#allocation2 + $0x8] sm:$0xff]  ;;  %s215_s1 = smov [#allocation7]  }
  0x27   :  { %v44_v2 = vand.u32 2147483647, %v40_v0  ;;  %v45_v3 = vand.u32 2147483647, %v41_v1  ;;  %v42_v14 = vld [vmem:[#allocation5] sm:$0xff]  ;;  %v43_v17 = vld [vmem:[#allocation5 + $0x8] sm:$0xff] }
  0x28   :  { %v52_v18 = vmax.f32 %v40_v0, 0.0  ;;  %v54_v19 = vmul.f32 %v42_v14, %v40_v0  ;;  %vm82_vm0 = vcmp.eq.f32.partialorder %v42_v14, 1.0  ;;  %vm84_vm1 = vcmp.ge.f32.partialorder %v40_v0, 0.0  ;;  %s109_s6 = sshll.u32 %s215_s1, 4  ;;  %s110_s6 = int_to_ptr.vmem [resolvable:$true] %s109_s6 }
  0x29   :  { %v46_v4 = vsub.f32 0.0, %v44_v2  ;;  %v47_v5 = vsub.f32 0.0, %v45_v3  ;;  %v92_v23 = vmul.f32 -0.5, %v42_v14  ;;  %v53_v24 = vmax.f32 %v41_v1, 0.0  ;;  %vm86_vm5 = vmxor %vm82_vm0, %vm84_vm1  ;;  %s183_s7 = scalar_lea.vmem %s110_s6, 256  ;;  %p188_p3 = scmp.lt.s32.totalorder %s110_s6, %s110_s6 }
  0x2a   :  { %v55_v25 = vmul.f32 %v43_v17, %v41_v1  ;;  %vm83_vm3 = vcmp.eq.f32.partialorder %v43_v17, 1.0  ;;  %vm85_vm4 = vcmp.ge.f32.partialorder %v41_v1, 0.0  ;;  %v56_v29 = vsub.f32 %v52_v18, %v54_v19  ;;  %p184_p2 = scmp.ne.s32.totalorder %s110_s6, %s183_s7  ;;  %p189_p4 = scmp.lt.s32.totalorder %s183_s7, %s183_s7 }
  0x2b   :  { %v48_v6 = vmul.f32 1.442695, %v46_v4  ;;  %v50_v7 = vmul.f32 1.442695, %v47_v5  ;;  %v93_v32 = vmul.f32 -0.5, %v43_v17  ;;  %v94_v37 = vadd.f32 0.75, %v92_v23  ;;  %vm87_vm7 = vmxor %vm83_vm3, %vm85_vm4 }
  0x2c   :  { %v57_v38 = vsub.f32 %v53_v24, %v55_v25  ;;  %p190_p5 = por %p189_p4, %p188_p3 }
  0x2d   :  { %127 = vpow2.f32 %v48_v6  ;;  %v95_v45 = vadd.f32 0.75, %v93_v32 }
  0x2e   :  { %129 = vpow2.f32 %v50_v7  ;;  %p191_p6 = pnand %p190_p5, %p184_p2 }
  0x37   :  { %v128_v8 = vpop.eup %127 }
  0x38   :  { %v130_v9 = vpop.eup %129  ;;  %v58_v10 = vadd.f32 1.0, %v128_v8  ;;  %v61_v12 = vmul.f32 -0.5, %v128_v8  ;;  %v64_v16 = vand.u32 2147483647, %v128_v8 }
  0x39   :  { %v67_v11 = vadd.f32 1.0, %v130_v9  ;;  %v70_v13 = vmul.f32 -0.5, %v130_v9  ;;  %v73_v21 = vand.u32 2147483647, %v130_v9 }
  0x3a   :  { %131 = vlog2.f32 %v58_v10  ;;  %v62_v15 = vadd.f32 1.0, %v61_v12  ;;  %vm261_vm2 = vcmp.lt.f32.partialorder %v64_v16, 0.0004427343 }
  0x3b   :  { %133 = vrcp.f32 %v58_v10  ;;  %v71_v20 = vadd.f32 1.0, %v70_v13  ;;  %vm74_vm6 = vcmp.lt.f32.partialorder %v73_v21, 0.0004427343 }
  0x3c   :  { %135 = vlog2.f32 %v67_v11  ;;  %v63_v22 = vmul.f32 %v128_v8, %v62_v15 }
  0x3d   :  { %137 = vrcp.f32 %v67_v11  ;;  %v72_v31 = vmul.f32 %v130_v9, %v71_v20 }
  0x44   :  { %v132_v26 = vpop.eup %131 }
  0x45   :  { %v134_v28 = vpop.eup %133  ;;  %v60_v30 = vmul.f32 0.6931472, %v132_v26 }
  0x46   :  { %v136_v33 = vpop.eup %135  ;;  %v88_v34 = vmul.f32 %v134_v28, %v128_v8 }
  0x47   :  { %v138_v35 = vpop.eup %137  ;;  %v66_v36 = vsel %vm261_vm2, %v63_v22, %v60_v30  ;;  %v69_v39 = vmul.f32 0.6931472, %v136_v33 }
  0x48   :  { %v90_v40 = vsel %vm86_vm5, %v134_v28, %v88_v34  ;;  %v89_v41 = vmul.f32 %v138_v35, %v130_v9  ;;  %v76_v42 = vadd.f32 %v66_v36, %v56_v29 }
  0x49   :  { %v96_v43 = vmul.f32 %v90_v40, %v90_v40  ;;  %v75_v44 = vsel %vm74_vm6, %v72_v31, %v69_v39 }
  0x4a   :  { %v91_v46 = vsel %vm87_vm7, %v138_v35, %v89_v41  ;;  %v77_v48 = vadd.f32 %v75_v44, %v57_v38 }
  0x4b   :  { %v98_v47 = vmul.f32 %v96_v43, %v94_v37  ;;  %v97_v49 = vmul.f32 %v91_v46, %v91_v46 }
  0x4d   :  { %v100_v50 = vmul.f32 %v98_v47, %v76_v42  ;;  %v99_v51 = vmul.f32 %v97_v49, %v95_v45 }
  0x4f   :  { %102 = vst [vmem:[#allocation7] sm:$0xff] %v100_v50  ;;  %v101_v52 = vmul.f32 %v99_v51, %v77_v48 }
  0x51   :  { %103 = vst [vmem:[#allocation7 + $0x8] sm:$0xff] %v101_v52 }
  0x52   :  { %194 = shalt.err (!%p191_p6)
}
  0x53   :  { %s195_s10 = scalar_lea.hbm %s286_s2, 256 }
  0x54   :  { %p196_p7 = scmp.ne.s32.totalorder %s286_s2, %s195_s10  ;;  %p199_p8 = scmp.lt.u32.totalorder %s195_s10, %s286_s2 }
  0x56   :  { %p201_p9 = pnand %p199_p8, %p196_p7 }
  0x58   :  { %204 = shalt.err (!%p201_p9)
}
  0x59   :  { %115 = dma.vmem_to_hbm [thread:$0]  %s110_s6, 256, %s286_s2, [#allocation4], %s212_s19, %s212_s19, %s213_s20  }
  0x5a   :  { %209 = dma.done.wait [#allocation4], 256  }
  0x5b   :  { %210 = vsyncadd [#allocation4], 4294967040 }
  0x5c   :  { %119 = vsyncpa [#allocation3], 1 }
  0x5d   :  { %120 = vsyncpa [#allocation6], 1 }
  0x5e   :  { %121 = vsyncpa [#allocation4], 1 }

</bundles_post_ra>
